<compile_context>
chip_gen: v6e
topology: v6e:2x2x1
jax: 0.10.0
libtpu: 0.0.40
codegen_flags: <defaults>
</compile_context>

<pallas_src>
import jax
import jax.numpy as jnp
from jax.experimental import pallas as pl
from jax.experimental.pallas import tpu as pltpu

LANE = 128
N_OUT = 10
MAX_TB = 2048     # max batch-tile rows (f32 x tile: 6.1 MiB, 2x-buffered ~12.3 MiB)
MIN_STEPS = 2     # keep >=2 grid steps so v7x megacore has work for both cores


def _round_up(x, m):
    return (x + m - 1) // m * m


def mlp_kernel(x_ref, w1_ref, b1_ref, w2_ref, b2_ref, w3_ref, b3_ref, o_ref):
    # x_ref : (TB, 784)  f32   — one batch tile (cast to bf16 in-kernel)
    # w1_ref: (784, 16)  bf16  — K-major, VMEM-resident across grid steps
    # b1_ref: (1, 16)    f32
    # w2_ref: (16, 32)   f32   — stored (in, out)
    # b2_ref: (1, 32)    f32
    # w3_ref: (32, 128)  f32   — stored (in, out), out-features zero-padded to 128
    # b3_ref: (1, 128)   f32
    # o_ref : (TB, 128)  bf16  — lane-dense output slab
    x = x_ref[...].astype(jnp.bfloat16)

    # fc1 + relu : (TB,784)bf16 @ (784,16)bf16, f32 MXU accumulation
    h1 = jnp.dot(x, w1_ref[...], preferred_element_type=jnp.float32)
    h1 = jnp.maximum(h1 + b1_ref[...], 0.0)

    # fc2 + relu : (TB,16) @ (16,32)
    h2 = jnp.dot(h1, w2_ref[...], preferred_element_type=jnp.float32)
    h2 = jnp.maximum(h2 + b2_ref[...], 0.0)

    # fc3 : (TB,32) @ (32,128) — padded columns carry zeros, sliced off on host
    out = jnp.dot(h2, w3_ref[...], preferred_element_type=jnp.float32) + b3_ref[...]
    o_ref[...] = out.astype(o_ref.dtype)


def init_params(key):
    """PyTorch nn.Linear-style params: weight (out, in), bias (out,), f32."""
    def linear(key, fan_in, fan_out):
        kw, kb = jax.random.split(key)
        bound = 1.0 / jnp.sqrt(fan_in)
        w = jax.random.uniform(kw, (fan_out, fan_in), jnp.float32, -bound, bound)
        b = jax.random.uniform(kb, (fan_out,), jnp.float32, -bound, bound)
        return w, b

    k1, k2, k3 = jax.random.split(key, 3)
    return (linear(k1, 784, 16), linear(k2, 16, 32), linear(k3, 32, 10))


def prepare_params(torch_params):
    """Host-side layout prep (done once, outside the hot path)."""
    (w1, b1), (w2, b2), (w3, b3) = torch_params
    np_ = _round_up(w3.shape[0], LANE)                       # 10 -> 128

    # fc1: K-major (in, out) bf16 so the kernel uses a plain (M,K)x(K,N) dot.
    w1p = w1.T.astype(jnp.bfloat16)                          # (784, 16)
    b1p = b1.reshape(1, -1).astype(jnp.float32)

    # fc2: tiny, keep f32, store (in, out)
    w2p = w2.T.astype(jnp.float32)                           # (16, 32)
    b2p = b2.reshape(1, -1).astype(jnp.float32)

    # fc3: store (in, out), zero-pad out-features to a full lane width
    w3p = jnp.zeros((w3.shape[1], np_), jnp.float32).at[:, :w3.shape[0]].set(w3.T)
    b3p = jnp.zeros((1, np_), jnp.float32).at[:, :w3.shape[0]].set(b3.reshape(1, -1))
    return (w1p, b1p, w2p, b2p, w3p, b3p)


def _choose_batch_tile(B, *, max_tb=MAX_TB, min_steps=MIN_STEPS):
    """Largest-feasible batch tile with >=min_steps grid steps and minimal padding."""
    if B <= 8:
        return B                                             # single full-dim block
    steps = max(min_steps, pl.cdiv(B, max_tb))
    return min(max_tb, _round_up(pl.cdiv(B, steps), 8))


def mlp_forward(x, kernel_params):
    w1, b1, w2, b2, w3, b3 = kernel_params
    B, K = x.shape
    np_ = w3.shape[1]                                        # padded output dim (128)

    tb = _choose_batch_tile(B)
    bp = _round_up(B, tb)
    grid = (bp // tb,)

    # Only pad the batch when the tile does not divide it (explicit remainder
    # handling — Pallas won't mask ragged block reads for us). No cast / K-pad.
    x_in = x if bp == B else jnp.zeros((bp, K), x.dtype).at[:B].set(x)

    flops = 2 * bp * (K * w1.shape[1] + w2.shape[0] * w2.shape[1] + w3.shape[0] * np_)
    bytes_accessed = (x_in.size * x_in.dtype.itemsize        # f32 x read
                      + w1.size * 2                          # bf16 fc1 weight
                      + 4 * (b1.size + w2.size + b2.size + w3.size + b3.size)
                      + 2 * bp * np_)                        # bf16 output writeback

    out = pl.pallas_call(
        mlp_kernel,
        out_shape=jax.ShapeDtypeStruct((bp, np_), jnp.bfloat16),
        grid=grid,
        in_specs=[
            pl.BlockSpec((tb, K), lambda i: (i, 0)),         # x: tiled along batch
            pl.BlockSpec(w1.shape, lambda i: (0, 0)),        # weights/biases resident
            pl.BlockSpec(b1.shape, lambda i: (0, 0)),
            pl.BlockSpec(w2.shape, lambda i: (0, 0)),
            pl.BlockSpec(b2.shape, lambda i: (0, 0)),
            pl.BlockSpec(w3.shape, lambda i: (0, 0)),
            pl.BlockSpec(b3.shape, lambda i: (0, 0)),
        ],
        out_specs=pl.BlockSpec((tb, np_), lambda i: (i, 0)),
        compiler_params=pltpu.CompilerParams(
            dimension_semantics=("parallel",),               # megacore sharding on v7x
            vmem_limit_bytes=32 * 1024 * 1024,               # headroom over v5e 16 MiB default
        ),
        cost_estimate=pl.CostEstimate(
            flops=flops, transcendentals=0, bytes_accessed=bytes_accessed),
    )(x_in, w1, b1, w2, b2, w3, b3)

    # TODO(synk): for max throughput, fuse this slice into the downstream consumer.
    return out[:B, :N_OUT].astype(jnp.float32)


def mlp_reference(x, torch_params):
    """Pure-JAX reference matching the kernel's bf16 storage of x / fc1 weight
    and the bf16 output dtype; f32 accumulation throughout."""
    (w1, b1), (w2, b2), (w3, b3) = torch_params
    xq = x.astype(jnp.bfloat16).astype(jnp.float32)
    w1q = w1.astype(jnp.bfloat16).astype(jnp.float32)
    h1 = jnp.maximum(jnp.dot(xq, w1q.T, precision="highest") + b1, 0.0)
    h2 = jnp.maximum(jnp.dot(h1, w2.T, precision="highest") + b2, 0.0)
    out = jnp.dot(h2, w3.T, precision="highest") + b3
    return out.astype(jnp.bfloat16).astype(jnp.float32)


if __name__ == "__main__":
    key = jax.random.PRNGKey(0)
    kx, kp_ = jax.random.split(key)

    batch = 8
    x = jax.random.normal(kx, (batch, 784), jnp.float32)

    torch_params = init_params(kp_)
    kernel_params = prepare_params(torch_params)

    out = jax.block_until_ready(mlp_forward(x, kernel_params))
    ref = mlp_reference(x, torch_params)

    assert out.shape == (batch, 10)
    max_err = float(jnp.max(jnp.abs(out - ref)))
    # rtol/atol=1e-2 covers a 1-ulp bf16 discrepancy from f32 accumulation-order
    # differences between the MXU and the XLA reference at the final bf16 cast.
    assert jnp.allclose(out, ref, atol=1e-2, rtol=1e-2), max_err

    print("KERNEL_OK")
</pallas_src>

<mosaic_0001>
module attributes {stable_mosaic.version = 11 : i64} {
  func.func @mlp_kernel(%arg0: i32, %arg1: memref<8x784xf32, #tpu.memory_space<vmem>>, %arg2: memref<784x16xbf16, #tpu.memory_space<vmem>>, %arg3: memref<1x16xf32, #tpu.memory_space<vmem>>, %arg4: memref<16x32xf32, #tpu.memory_space<vmem>>, %arg5: memref<1x32xf32, #tpu.memory_space<vmem>>, %arg6: memref<32x128xf32, #tpu.memory_space<vmem>>, %arg7: memref<1x128xf32, #tpu.memory_space<vmem>>, %arg8: memref<8x128xbf16, #tpu.memory_space<vmem>>) attributes {dimension_semantics = [#tpu.dimension_semantics<parallel>], iteration_bounds = array<i64: 1>, scalar_prefetch = 0 : i64, scratch_operands = 0 : i64, tpu.core_type = #tpu.core_type<tc>, window_params = [{transform_indices = @transform_0, window_bounds = array<i64: 8, 784>}, {pipeline_mode = #tpu.pipeline_mode<synchronous>, transform_indices = @transform_1, window_bounds = array<i64: 784, 16>}, {pipeline_mode = #tpu.pipeline_mode<synchronous>, transform_indices = @transform_2, window_bounds = array<i64: 1, 16>}, {pipeline_mode = #tpu.pipeline_mode<synchronous>, transform_indices = @transform_3, window_bounds = array<i64: 16, 32>}, {pipeline_mode = #tpu.pipeline_mode<synchronous>, transform_indices = @transform_4, window_bounds = array<i64: 1, 32>}, {pipeline_mode = #tpu.pipeline_mode<synchronous>, transform_indices = @transform_5, window_bounds = array<i64: 32, 128>}, {pipeline_mode = #tpu.pipeline_mode<synchronous>, transform_indices = @transform_6, window_bounds = array<i64: 1, 128>}, {transform_indices = @transform_7, window_bounds = array<i64: 8, 128>}]} {
    %c0 = arith.constant 0 : index
    %c0_0 = arith.constant 0 : index
    %0 = vector.load %arg1[%c0, %c0_0] : memref<8x784xf32, #tpu.memory_space<vmem>>, vector<8x784xf32>
    %1 = arith.truncf %0 : vector<8x784xf32> to vector<8x784xbf16>
    %c0_1 = arith.constant 0 : index
    %c0_2 = arith.constant 0 : index
    %2 = vector.load %arg2[%c0_1, %c0_2] : memref<784x16xbf16, #tpu.memory_space<vmem>>, vector<784x16xbf16>
    %cst = arith.constant dense<0.000000e+00> : vector<8x16xf32>
    %3 = tpu.matmul %1, %2, %cst {dimension_numbers = #tpu.dot_dimension_numbers<[1], [0], [0], [1], [0, 0, 1, 1], [], []>} : vector<8x784xbf16>, vector<784x16xbf16>, vector<8x16xf32> -> vector<8x16xf32>
    %c0_3 = arith.constant 0 : index
    %c0_4 = arith.constant 0 : index
    %4 = vector.load %arg3[%c0_3, %c0_4] : memref<1x16xf32, #tpu.memory_space<vmem>>, vector<1x16xf32>
    %5 = vector.broadcast %4 : vector<1x16xf32> to vector<8x16xf32>
    %6 = arith.addf %3, %5 : vector<8x16xf32>
    %cst_5 = arith.constant 0.000000e+00 : f32
    %7 = vector.broadcast %cst_5 : f32 to vector<8x16xf32>
    %8 = arith.maximumf %6, %7 : vector<8x16xf32>
    %c0_6 = arith.constant 0 : index
    %c0_7 = arith.constant 0 : index
    %9 = vector.load %arg4[%c0_6, %c0_7] : memref<16x32xf32, #tpu.memory_space<vmem>>, vector<16x32xf32>
    %cst_8 = arith.constant dense<0.000000e+00> : vector<8x32xf32>
    %10 = tpu.matmul %8, %9, %cst_8 {dimension_numbers = #tpu.dot_dimension_numbers<[1], [0], [0], [1], [0, 0, 1, 1], [], []>} : vector<8x16xf32>, vector<16x32xf32>, vector<8x32xf32> -> vector<8x32xf32>
    %c0_9 = arith.constant 0 : index
    %c0_10 = arith.constant 0 : index
    %11 = vector.load %arg5[%c0_9, %c0_10] : memref<1x32xf32, #tpu.memory_space<vmem>>, vector<1x32xf32>
    %12 = vector.broadcast %11 : vector<1x32xf32> to vector<8x32xf32>
    %13 = arith.addf %10, %12 : vector<8x32xf32>
    %cst_11 = arith.constant 0.000000e+00 : f32
    %14 = vector.broadcast %cst_11 : f32 to vector<8x32xf32>
    %15 = arith.maximumf %13, %14 : vector<8x32xf32>
    %c0_12 = arith.constant 0 : index
    %c0_13 = arith.constant 0 : index
    %16 = vector.load %arg6[%c0_12, %c0_13] : memref<32x128xf32, #tpu.memory_space<vmem>>, vector<32x128xf32>
    %cst_14 = arith.constant dense<0.000000e+00> : vector<8x128xf32>
    %17 = tpu.matmul %15, %16, %cst_14 {dimension_numbers = #tpu.dot_dimension_numbers<[1], [0], [0], [1], [0, 0, 1, 1], [], []>} : vector<8x32xf32>, vector<32x128xf32>, vector<8x128xf32> -> vector<8x128xf32>
    %c0_15 = arith.constant 0 : index
    %c0_16 = arith.constant 0 : index
    %18 = vector.load %arg7[%c0_15, %c0_16] : memref<1x128xf32, #tpu.memory_space<vmem>>, vector<1x128xf32>
    %19 = vector.broadcast %18 : vector<1x128xf32> to vector<8x128xf32>
    %20 = arith.addf %17, %19 : vector<8x128xf32>
    %21 = arith.truncf %20 : vector<8x128xf32> to vector<8x128xbf16>
    %c0_17 = arith.constant 0 : index
    %c0_18 = arith.constant 0 : index
    %22 = vector.load %arg8[%c0_17, %c0_18] : memref<8x128xbf16, #tpu.memory_space<vmem>>, vector<8x128xbf16>
    tpu.vector_store %arg8[%c0_17, %c0_18], %21 {strides = array<i32>} : memref<8x128xbf16, #tpu.memory_space<vmem>>, vector<8x128xbf16>,
    return
  }
  func.func @transform_0(%arg0: i32) -> (i32, i32) {
    %c0_i32 = arith.constant 0 : i32
    %c0_i32_0 = arith.constant 0 : i32
    return %arg0, %c0_i32 : i32, i32
  }
  func.func @transform_1(%arg0: i32) -> (i32, i32) {
    %c0_i32 = arith.constant 0 : i32
    %c0_i32_0 = arith.constant 0 : i32
    %c0_i32_1 = arith.constant 0 : i32
    return %c0_i32, %c0_i32_0 : i32, i32
  }
  func.func @transform_2(%arg0: i32) -> (i32, i32) {
    %c0_i32 = arith.constant 0 : i32
    %c0_i32_0 = arith.constant 0 : i32
    %c0_i32_1 = arith.constant 0 : i32
    return %c0_i32, %c0_i32_0 : i32, i32
  }
  func.func @transform_3(%arg0: i32) -> (i32, i32) {
    %c0_i32 = arith.constant 0 : i32
    %c0_i32_0 = arith.constant 0 : i32
    %c0_i32_1 = arith.constant 0 : i32
    return %c0_i32, %c0_i32_0 : i32, i32
  }
  func.func @transform_4(%arg0: i32) -> (i32, i32) {
    %c0_i32 = arith.constant 0 : i32
    %c0_i32_0 = arith.constant 0 : i32
    %c0_i32_1 = arith.constant 0 : i32
    return %c0_i32, %c0_i32_0 : i32, i32
  }
  func.func @transform_5(%arg0: i32) -> (i32, i32) {
    %c0_i32 = arith.constant 0 : i32
    %c0_i32_0 = arith.constant 0 : i32
    %c0_i32_1 = arith.constant 0 : i32
    return %c0_i32, %c0_i32_0 : i32, i32
  }
  func.func @transform_6(%arg0: i32) -> (i32, i32) {
    %c0_i32 = arith.constant 0 : i32
    %c0_i32_0 = arith.constant 0 : i32
    %c0_i32_1 = arith.constant 0 : i32
    return %c0_i32, %c0_i32_0 : i32, i32
  }
  func.func @transform_7(%arg0: i32) -> (i32, i32) {
    %c0_i32 = arith.constant 0 : i32
    %c0_i32_0 = arith.constant 0 : i32
    return %arg0, %c0_i32 : i32, i32
  }
}

</mosaic_0001>

<bundles_post_ra>
// kernel: tpu_custom_call.1
= control target key start
LH: loop header
LB: loop body
LE: loop exit
PB: predicated region body
PF: predicated region fallthrough
CT: control target
= control target key end

     0   :  { %v1019_v44 = vmov 0.0   ;;  %vm1020_vm0 = vmmov 0   ;;  %s1275_s0 = inlined_call_operand.vmem [shape: f32[8,784], index: 0, kind: input, shape index: {}]   ;;  %s1276_s1 = inlined_call_operand.vmem [shape: bf16[784,16], index: 1, kind: input, shape index: {}]   ;;  %s1277_s2 = inlined_call_operand.vmem [shape: f32[1,16], index: 2, kind: input, shape index: {}]   ;;  %s1278_s3 = inlined_call_operand.vmem [shape: f32[16,32], index: 3, kind: input, shape index: {}]   ;;  %s1279_s4 = inlined_call_operand.vmem [shape: f32[1,32], index: 4, kind: input, shape index: {}]   ;;  %s1280_s5 = inlined_call_operand.vmem [shape: f32[32,128], index: 5, kind: input, shape index: {}]   ;;  %s1281_s6 = inlined_call_operand.vmem [shape: f32[1,128], index: 6, kind: input, shape index: {}]   ;;  %s1282_s7 = inlined_call_operand.hbm [shape: bf16[8,128], index: 7, kind: output, shape index: {}]  }
   0x1   :  { %v948_v0 = vld [vmem:[%s1276_s1 + $0x78] sm:$0xff]   ;;  %v952_v4 = vld [vmem:[%s1276_s1 + $0x70] sm:$0xff]   ;;  %v956_v8 = vld [vmem:[%s1276_s1 + $0x68] sm:$0xff]  }
   0x2   :  { %v949_v1 = vld [vmem:[%s1276_s1 + $0x38] sm:$0xff]   ;;  %845 = vmatprep.subr.bf16.mxu0 %v948_v0  ;;  %v953_v5 = vld [vmem:[%s1276_s1 + $0x30] sm:$0xff]   ;;  %v957_v9 = vld [vmem:[%s1276_s1 + $0x28] sm:$0xff]  }
   0x3   :  { %v950_v2 = vld [vmem:[%s1276_s1 + $0xf8] sm:$0xff]   ;;  %846 = vmatpush3.bf16.msra.mxu0 %v949_v1  ;;  %v954_v6 = vld [vmem:[%s1276_s1 + $0xf0] sm:$0xff]   ;;  %v958_v10 = vld [vmem:[%s1276_s1 + $0xe8] sm:$0xff]  }
   0x4   :  { %v951_v3 = vld [vmem:[%s1276_s1 + $0xb8] sm:$0xff]   ;;  %867 = vmatprep.subr.bf16.mxu1 %v950_v2  ;;  %847 = vmatprep.subr.bf16.mxu0 %v952_v4  ;;  %v955_v7 = vld [vmem:[%s1276_s1 + $0xb0] sm:$0xff]   ;;  %v959_v11 = vld [vmem:[%s1276_s1 + $0xa8] sm:$0xff]  }
   0x5   :  { %868 = vmatpush3.bf16.msra.mxu1 %v951_v3  ;;  %v960_v12 = vld [vmem:[%s1276_s1 + $0x60] sm:$0xff]   ;;  %v964_v16 = vld [vmem:[%s1276_s1 + $0x58] sm:$0xff]   ;;  %v968_v20 = vld [vmem:[%s1276_s1 + $0x50] sm:$0xff]  }
   0x6   :  { %869 = vmatprep.subr.bf16.mxu1 %v954_v6  ;;  %v961_v13 = vld [vmem:[%s1276_s1 + $0x20] sm:$0xff]   ;;  %v965_v17 = vld [vmem:[%s1276_s1 + $0x18] sm:$0xff]   ;;  %v969_v21 = vld [vmem:[%s1276_s1 + $0x10] sm:$0xff]  }
   0x7   :  { %848 = vmatpush3.bf16.msra.mxu0 %v953_v5  ;;  %v962_v14 = vld [vmem:[%s1276_s1 + $0xe0] sm:$0xff]   ;;  %v966_v18 = vld [vmem:[%s1276_s1 + $0xd8] sm:$0xff]   ;;  %v970_v22 = vld [vmem:[%s1276_s1 + $0xd0] sm:$0xff]  }
   0x8   :  { %849 = vmatprep.subr.bf16.mxu0 %v956_v8  ;;  %v963_v15 = vld [vmem:[%s1276_s1 + $0xa0] sm:$0xff]   ;;  %v967_v19 = vld [vmem:[%s1276_s1 + $0x98] sm:$0xff]   ;;  %v971_v23 = vld [vmem:[%s1276_s1 + $0x90] sm:$0xff]  }
   0x9   :  { %870 = vmatpush3.bf16.msra.mxu1 %v955_v7  ;;  %v972_v24 = vld [vmem:[%s1276_s1 + $0x48] sm:$0xff]   ;;  %v976_v28 = vld [vmem:[%s1276_s1 + $0x40] sm:$0xff]   ;;  %v980_v36 = vld [vmem:[%s1276_s1 + $0x178] sm:$0xff]  }
   0xa   :  { %871 = vmatprep.subr.bf16.mxu1 %v958_v10  ;;  %v973_v25 = vld [vmem:[%s1276_s1 + $0x8] sm:$0xff]   ;;  %v977_v29 = vld [vmem:[%s1276_s1] sm:$0xff]   ;;  %v31_v37 = vld [vmem:[%s1275_s0 + $0x18] sm:$0xff] }
   0xb   :  { %850 = vmatpush3.bf16.msra.mxu0 %v957_v9  ;;  %v974_v26 = vld [vmem:[%s1276_s1 + $0xc8] sm:$0xff]   ;;  %v978_v30 = vld [vmem:[%s1276_s1 + $0xc0] sm:$0xff]   ;;  %v38_v38 = vpack.c.bf16 %v31_v37, %v31_v37  ;;  %v981_v39 = vld [vmem:[%s1276_s1 + $0x138] sm:$0xff]  }
   0xc   :  { %851 = vmatprep.subr.bf16.mxu0 %v960_v12  ;;  %v975_v27 = vld [vmem:[%s1276_s1 + $0x88] sm:$0xff]   ;;  %v979_v33 = vld [vmem:[%s1276_s1 + $0x80] sm:$0xff]   ;;  %v30_v40 = vld [vmem:[%s1275_s0 + $0x10] sm:$0xff] }
   0xd   :  { %872 = vmatpush3.bf16.msra.mxu1 %v959_v11  ;;  %v29_v31 = vld [vmem:[%s1275_s0 + $0x8] sm:$0xff]  ;;  %v28_v34 = vld [vmem:[%s1275_s0] sm:$0xff]  ;;  %517 = vmatprep.mubr.bf16.mxu1 %v38_v38  ;;  %v37_v41 = vpack.c.bf16 %v30_v40, %v30_v40  ;;  %v982_v42 = vld [vmem:[%s1276_s1 + $0x170] sm:$0xff]  }
   0xe   :  { %873 = vmatprep.subr.bf16.mxu1 %v962_v14  ;;  %v36_v32 = vpack.c.bf16 %v29_v31, %v29_v31  ;;  %v35_v35 = vpack.c.bf16 %v28_v34, %v28_v34  ;;  %v983_v43 = vld [vmem:[%s1276_s1 + $0x130] sm:$0xff]   ;;  %v984_v45 = vld [vmem:[%s1276_s1 + $0x168] sm:$0xff]   ;;  %v986_v47 = vld [vmem:[%s1276_s1 + $0x160] sm:$0xff]  }
   0xf   :  { %852 = vmatpush3.bf16.msra.mxu0 %v961_v13  ;;  %v985_v46 = vld [vmem:[%s1276_s1 + $0x128] sm:$0xff]   ;;  %v987_v48 = vld [vmem:[%s1276_s1 + $0x120] sm:$0xff]   ;;  %v988_v49 = vld [vmem:[%s1276_s1 + $0x158] sm:$0xff]  }
  0x10   :  { %853 = vmatprep.subr.bf16.mxu0 %v964_v16  ;;  %477 = vmatprep.mubr.bf16.mxu0 %v36_v32  ;;  %v989_v50 = vld [vmem:[%s1276_s1 + $0x118] sm:$0xff]   ;;  %v990_v51 = vld [vmem:[%s1276_s1 + $0x150] sm:$0xff]   ;;  %v996_v52 = vld [vmem:[%s1276_s1 + $0x180] sm:$0xff]  }
  0x11   :  { %874 = vmatpush3.bf16.msra.mxu1 %v963_v15  ;;  %v33_v53 = vld [vmem:[%s1275_s0 + $0x28] sm:$0xff]  ;;  %v34_v55 = vld [vmem:[%s1275_s0 + $0x30] sm:$0xff] }
  0x12   :  { %875 = vmatprep.subr.bf16.mxu1 %v966_v18  ;;  %v40_v54 = vpack.c.bf16 %v33_v53, %v33_v53 }
  0x13   :  { %854 = vmatpush3.bf16.msra.mxu0 %v965_v17 }
  0x14   :  { %855 = vmatprep.subr.bf16.mxu0 %v968_v20 }
  0x15   :  { %876 = vmatpush3.bf16.msra.mxu1 %v967_v19 }
  0x16   :  { %877 = vmatprep.subr.bf16.mxu1 %v970_v22 }
  0x17   :  { %856 = vmatpush3.bf16.msra.mxu0 %v969_v21 }
  0x18   :  { %857 = vmatprep.subr.bf16.mxu0 %v972_v24 }
  0x19   :  { %878 = vmatpush3.bf16.msra.mxu1 %v971_v23 }
  0x1a   :  { %879 = vmatprep.subr.bf16.mxu1 %v974_v26 }
  0x1b   :  { %858 = vmatpush3.bf16.msra.mxu0 %v973_v25 }
  0x1c   :  { %859 = vmatprep.subr.bf16.mxu0 %v976_v28 }
  0x1d   :  { %880 = vmatpush3.bf16.msra.mxu1 %v975_v27 }
  0x1e   :  { %881 = vmatprep.subr.bf16.mxu1 %v978_v30 }
  0x1f   :  { %860 = vmatpush3.bf16.msra.mxu0 %v977_v29 }
  0x20   :  { %889 = vmatprep.subr.bf16.mxu0 %v980_v36 }
  0x21   :  { %882 = vmatpush3.bf16.msra.mxu1 %v979_v33 }
  0x22   :  { %478 = vmatmul.mubr.bf16.vlgmr.msra.gmra.mxu0 %v35_v35  ;;  %921 = vmatprep.subr.bf16.mxu1 %v1019_v44 }
  0x23   :  { %890 = vmatpush3.bf16.msra.mxu0 %v981_v39 }
  0x24   :  { %518 = vmatmul.mubr.bf16.vlgmr.msra.gmra.mxu1 %v37_v41  ;;  %891 = vmatprep.subr.bf16.mxu0 %v982_v42 }
  0x25   :  { %923 = vmatprep.mubr.msk.bf16.mxu1 %vm1020_vm0, %v1019_v44 }
  0x27   :  { %892 = vmatpush3.bf16.msra.mxu0 %v983_v43 }
  0x28   :  { %893 = vmatprep.subr.bf16.mxu0 %v984_v45 }
  0x2b   :  { %894 = vmatpush3.bf16.msra.mxu0 %v985_v46 }
  0x2c   :  { %895 = vmatprep.subr.bf16.mxu0 %v986_v47 }
  0x2f   :  { %896 = vmatpush3.bf16.msra.mxu0 %v987_v48 }
  0x30   :  { %897 = vmatprep.subr.bf16.mxu0 %v988_v49 }
  0x31   :  { %12 = vsyncpa [#allocation3], 0  ;;  %v991_v56 = vld [vmem:[%s1276_s1 + $0x110] sm:$0xff]   ;;  %922 = vmatpush3.bf16.msra.mxu1 %v996_v52  ;;  %v41_v57 = vpack.c.bf16 %v34_v55, %v34_v55  ;;  %vm441_vm1 = vcmask 130048   ;;  %v992_v58 = vld [vmem:[%s1276_s1 + $0x148] sm:$0xff]   ;;  %557 = vmatprep.mubr.bf16.mxu0 %v40_v54  ;;  %vm700_vm2 = vcmask 261120  }
  0x32   :  { %927 = vmatprep.subr.mxu1 %v1019_v44  ;;  %v993_v59 = vld [vmem:[%s1276_s1 + $0x108] sm:$0xff]   ;;  %v994_v60 = vld [vmem:[%s1276_s1 + $0x140] sm:$0xff]   ;;  %v692_v27 = vld [vmem:[%s1280_s5 + $0x18] sm:$0xff]  ;;  %s1021_s12 = smov [#allocation2]  }
  0x33   :  { %898 = vmatpush3.bf16.msra.mxu0 %v989_v50  ;;  %v995_v61 = vld [vmem:[%s1276_s1 + $0x100] sm:$0xff]   ;;  %v607_v0 = vld [vmem:[%s1278_s3 + $0x8] sm:$0xff]  ;;  %v691_v28 = vld [vmem:[%s1280_s5 + $0x10] sm:$0xff] }
  0x34   :  { %899 = vmatprep.subr.bf16.mxu0 %v990_v51  ;;  %924 = vmatmul.mubr.msk.bf16.vlgmr.msra.gmra.mxu1 %vm441_vm1, %v41_v57  ;;  %v32_v62 = vld [vmem:[%s1275_s0 + $0x20] sm:$0xff]  ;;  %v690_v29 = vld [vmem:[%s1280_s5 + $0x8] sm:$0xff] }
  0x35   :  { %931 = vmatprep.mubr.msk.f32.mxu1 %vm1020_vm0, %v1019_v44  ;;  %v39_v63 = vpack.c.bf16 %v32_v62, %v32_v62  ;;  %928 = vmatpush3.msra.mxu1 %v607_v0  ;;  %v606_v1 = vld [vmem:[%s1278_s3] sm:$0xff] }
  0x36   :  { %929 = vmatprep.subr.mxu1 %v1019_v44  ;;  %v790_v15 = vld [vmem:[%s1277_s2] ss:$0 sm:$0xff] }
  0x37   :  { %900 = vmatpush3.bf16.msra.mxu0 %v991_v56  ;;  %930 = vmatpush3.msra.mxu1 %v606_v1  ;;  %v689_v30 = vld [vmem:[%s1280_s5] sm:$0xff]  ;;  %s782_s5 = sshll.u32 %s1021_s12, 4  ;;  %s783_s5 = int_to_ptr.vmem [resolvable:$true] %s782_s5 }
  0x38   :  { %901 = vmatprep.subr.bf16.mxu0 %v992_v58  ;;  %934 = vmatprep.subr.mxu1 %v1019_v44  ;;  %v841_v31 = vld [vmem:[%s1279_s4] ss:$0 sm:$0xff]  ;;  %s997_s13 = scalar_lea.vmem %s783_s5, 64  ;;  %p1002_p1 = scmp.lt.s32.totalorder %s783_s5, %s783_s5 }
  0x39   :  { %v843_v36 = vld [vmem:[%s1281_s6] ss:$0 sm:$0xff]  ;;  %p998_p0 = scmp.ne.s32.totalorder %s783_s5, %s997_s13  ;;  %p1003_p2 = scmp.lt.s32.totalorder %s997_s13, %s997_s13 }
  0x3b   :  { %902 = vmatpush3.bf16.msra.mxu0 %v993_v59  ;;  %p1004_p3 = por %p1003_p2, %p1002_p1 }
  0x3c   :  { %903 = vmatprep.subr.bf16.mxu0 %v994_v60 }
  0x3d   :  { %p1005_p4 = pnand %p1004_p3, %p998_p0 }
  0x3f   :  { %904 = vmatpush3.bf16.msra.mxu0 %v995_v61 }
  0x42   :  { %558 = vmatmul.mubr.bf16.vlgmr.msra.gmra.mxu0 %v39_v63 }
  0xe2   :  { %v861_v2 = vpop.f32.mrf.mxu0 }
  0xe4   :  { %v862_v3 = vpop.f32.mrf.mxu0  ;;  %v883_v4 = vpop.f32.mrf.mxu1 }
  0xe5   :  { %v863_v14 = vadd.f32 %v862_v3, %v861_v2 }
  0xe6   :  { %v864_v5 = vpop.f32.mrf.mxu0  ;;  %v884_v6 = vpop.f32.mrf.mxu1 }
  0xe7   :  { %v480_v16 = vadd.f32 %v863_v14, %v790_v15  ;;  %v885_v17 = vadd.f32 %v884_v6, %v883_v4 }
  0xe8   :  { %v865_v7 = vpop.f32.mrf.mxu0  ;;  %v886_v8 = vpop.f32.mrf.mxu1 }
  0xe9   :  { %v520_v20 = vadd.f32 %v885_v17, %v480_v16 }
  0xea   :  { %v887_v9 = vpop.f32.mrf.mxu1 }
  0xf4   :  { %v599_v10 = vpop.f32.mrf.mxu1 }
  0xf6   :  { %v925_v11 = vpop.f32.mrf.mxu1 }
  0xf8   :  { %v602_v12 = vpop.f32.mrf.mxu1 }
  0xfa   :  { %v926_v13 = vpop.f32.mrf.mxu1 }
 0x102   :  { %v905_v18 = vpop.f32.mrf.mxu0 }
 0x104   :  { %v906_v19 = vpop.f32.mrf.mxu0 }
 0x105   :  { %v907_v21 = vadd.f32 %v906_v19, %v905_v18 }
 0x106   :  { %v908_v22 = vpop.f32.mrf.mxu0 }
 0x107   :  { %v560_v23 = vadd.f32 %v907_v21, %v520_v20 }
 0x108   :  { %v909_v24 = vpop.f32.mrf.mxu0 }
 0x109   :  { %v600_v25 = vadd.f32 %v599_v10, %v560_v23 }
 0x10b   :  { %v605_v26 = vmax.f32 %v600_v25, 0.0 }
 0x10d   :  { %932 = vmatmul.mubr.msk.f32.vlgmr.msra.gmra.mxu1 %vm441_vm1, %v605_v26 }
 0x10e   :  { %935 = vmatpush3.msra.mxu1 %v692_v27  ;;  %942 = vmatprep.mubr.msk.f32.mxu1 %vm1020_vm0, %v1019_v44 }
 0x10f   :  { %936 = vmatprep.subr.mxu1 %v1019_v44 }
 0x110   :  { %937 = vmatpush3.msra.mxu1 %v691_v28 }
 0x111   :  { %938 = vmatprep.subr.mxu1 %v1019_v44 }
 0x112   :  { %939 = vmatpush3.msra.mxu1 %v690_v29 }
 0x113   :  { %940 = vmatprep.subr.mxu1 %v1019_v44 }
 0x114   :  { %941 = vmatpush3.msra.mxu1 %v689_v30 }
 0x1cd   :  { %v684_v32 = vpop.f32.mrf.mxu1 }
 0x1ce   :  { %v685_v33 = vadd.f32 %v841_v31, %v684_v32 }
 0x1cf   :  { %v933_v34 = vpop.f32.mrf.mxu1 }
 0x1d0   :  { %v688_v35 = vmax.f32 %v685_v33, 0.0 }
 0x1d2   :  { %943 = vmatmul.mubr.msk.f32.vlgmr.msra.gmra.mxu1 %vm700_vm2, %v688_v35 }
 0x292   :  { %v770_v37 = vpop.f32.mrf.mxu1 }
 0x293   :  { %v771_v38 = vadd.f32 %v843_v36, %v770_v37 }
 0x294   :  { %v944_v39 = vpop.f32.mrf.mxu1 }
 0x295   :  { %v774_v40 = vpack.c.bf16 %v771_v38, %v771_v38 }
 0x297   :  { %775 = vst [vmem:[#allocation2] sm:$0xf] %v774_v40 }
 0x298   :  { %1008 = shalt.err (!%p1005_p4)
}
 0x299   :  { %785 = dma.vmem_to_hbm [thread:$0]  %s783_s5, 64, %s1282_s7, [#allocation3]  }
 0x29a   :  { %1017 = dma.done.wait [#allocation3], 64  }
 0x29b   :  { %1018 = vsyncadd [#allocation3], 4294967232 }
 0x29c   :  { %789 = vsyncpa [#allocation3], 1 }

</bundles_post_ra>
